<compile_context>
chip_gen: v5e
topology: v5e:2x2
jax: 0.10.0
libtpu: 0.0.40
codegen_flags: <defaults>
</compile_context>

<pallas_src>
import jax
import jax.numpy as jnp
from jax import lax
from jax.experimental import pallas as pl
from jax.experimental.pallas import tpu as pltpu


def _make_clip_loss_kernel(has_mask):
    def kernel(scale_ref, a_blk_ref, m_blk_ref, a_all_ref, m_all_ref, *rest):
        if has_mask:
            mask_ref, mdiag_ref, audio_pr_ref, motion_pr_ref = rest
        else:
            audio_pr_ref, motion_pr_ref = rest

        scale = scale_ref[0, 0]            # f32 scalar from SMEM

        a_blk = a_blk_ref[...]             # (TM, Dp) native dtype -> straight to MXU
        m_blk = m_blk_ref[...]             # (TM, Dp)
        a_all = a_all_ref[...]             # (N,  Dp) resident across the grid
        m_all = m_all_ref[...]             # (N,  Dp)

        # Contract the feature axis of BOTH operands (== A @ B.T); f32 accumulation.
        dn = (((1,), (1,)), ((), ()))
        logits_a = scale * lax.dot_general(a_blk, m_all, dn,
                                           preferred_element_type=jnp.float32)  # (TM, N)
        logits_m = scale * lax.dot_general(m_blk, a_all, dn,
                                           preferred_element_type=jnp.float32)  # (TM, N)

        # Target logit (diagonal element) is identical for both losses:
        # O(TM*D) elementwise dot instead of an N*N diag-mask reduction.
        tgt = scale * jnp.sum(a_blk.astype(jnp.float32) * m_blk.astype(jnp.float32),
                              axis=-1, keepdims=True)                            # (TM, 1)

        if has_mask:
            mask = mask_ref[...].astype(jnp.float32)       # (TM, N) rows of clip_mask
            logits_a = logits_a + mask
            logits_m = logits_m + mask
            tgt = tgt + mdiag_ref[...]                     # (TM, 1) diag(clip_mask)

        def row_lse(logits):
            # Numerically stable log-sum-exp over the class axis, kept in f32.
            mx = jnp.max(logits, axis=-1, keepdims=True)
            return mx + jnp.log(jnp.sum(jnp.exp(logits - mx), axis=-1, keepdims=True))

        audio_pr_ref[...] = row_lse(logits_a) - tgt        # per-row CE, audio rows
        motion_pr_ref[...] = row_lse(logits_m) - tgt       # per-row CE, motion rows

    return kernel


def _pick_row_tile(n):
    # Largest row tile capped at 256 so the per-step working set (two (TM, N)
    # logits strips + mask strip, double-buffered) stays comfortably inside
    # v7x's 64 MiB VMEM while still amortizing the ~0.35 us per-step overhead.
    if n <= 256:
        return n
    for tm in (256, 128, 64, 32, 16, 8):
        if n % tm == 0:
            return tm
    # TODO(synk): ragged N with no small divisor falls back to a single strip.
    return n


def clip_loss(audio_features, motion_features, logit_scale, clip_mask=None):
    n, d = audio_features.shape

    # Lane-dense feature axis: zero-pad D up to a multiple of 128.
    d_pad = max(128, ((d + 127) // 128) * 128)
    if d_pad != d:
        pad = ((0, 0), (0, d_pad - d))
        a = jnp.pad(audio_features, pad)
        m = jnp.pad(motion_features, pad)
    else:
        a, m = audio_features, motion_features

    tm = _pick_row_tile(n)
    grid = (n // tm,)
    has_mask = clip_mask is not None

    ls = jnp.asarray(logit_scale, jnp.float32).reshape(1, 1)

    in_specs = [
        pl.BlockSpec(memory_space=pltpu.MemorySpace.SMEM),   # logit_scale (1,1)
        pl.BlockSpec((tm, d_pad), lambda i: (i, 0)),         # audio rows (strip)
        pl.BlockSpec((tm, d_pad), lambda i: (i, 0)),         # motion rows (strip)
        pl.BlockSpec((n, d_pad), lambda i: (0, 0)),          # audio (resident, fetched once)
        pl.BlockSpec((n, d_pad), lambda i: (0, 0)),          # motion (resident, fetched once)
    ]
    args = [ls, a, m, a, m]

    if has_mask:
        mask = jnp.asarray(clip_mask, jnp.float32)
        mdiag = jnp.diagonal(mask).reshape(n, 1)
        in_specs += [
            pl.BlockSpec((tm, n), lambda i: (i, 0)),         # clip_mask row strip
            pl.BlockSpec((tm, 1), lambda i: (i, 0)),         # diag(clip_mask) strip
        ]
        args += [mask, mdiag]

    out_specs = (pl.BlockSpec((tm, 1), lambda i: (i, 0)),
                 pl.BlockSpec((tm, 1), lambda i: (i, 0)))
    out_shape = (jax.ShapeDtypeStruct((n, 1), jnp.float32),
                 jax.ShapeDtypeStruct((n, 1), jnp.float32))

    audio_pr, motion_pr = pl.pallas_call(
        _make_clip_loss_kernel(has_mask),
        grid=grid,
        in_specs=in_specs,
        out_specs=out_specs,
        out_shape=out_shape,
        compiler_params=pltpu.CompilerParams(
            dimension_semantics=("parallel",),
            vmem_limit_bytes=64 * 1024 * 1024),
    )(*args)

    audio_loss = jnp.mean(audio_pr)
    motion_loss = jnp.mean(motion_pr)
    return {
        "audio_loss": audio_loss,
        "motion_loss": motion_loss,
        "clip_loss": (audio_loss + motion_loss) * 0.5,
    }


def _ref_clip_loss(a, m, scale, mask):
    # Pure-JAX reference mirroring the PyTorch forward.
    la = scale * a @ m.T + mask
    lm = scale * m @ a.T + mask

    def ce(logits):
        lse = jax.scipy.special.logsumexp(logits, axis=-1)
        tgt = jnp.diagonal(logits)
        return jnp.mean(lse - tgt)

    al = ce(la)
    ml = ce(lm)
    return al, ml, (al + ml) / 2.0


if __name__ == "__main__":
    N, D = 8, 32   # batch (classes) x feature dim
    key = jax.random.PRNGKey(0)
    k_a, k_m, k_mask = jax.random.split(key, 3)

    audio = jax.random.normal(k_a, (N, D), jnp.float32)
    motion = jax.random.normal(k_m, (N, D), jnp.float32)
    audio = audio / jnp.linalg.norm(audio, axis=-1, keepdims=True)
    motion = motion / jnp.linalg.norm(motion, axis=-1, keepdims=True)
    logit_scale = jnp.float32(14.285714)  # 1 / 0.07
    clip_mask = 0.1 * jax.random.normal(k_mask, (N, N), jnp.float32)

    # Masked path.
    out = clip_loss(audio, motion, logit_scale, clip_mask)
    jax.block_until_ready(out)
    ra, rm, rc = _ref_clip_loss(audio, motion, logit_scale, clip_mask)
    assert jnp.allclose(out["audio_loss"], ra, atol=1e-4, rtol=1e-4)
    assert jnp.allclose(out["motion_loss"], rm, atol=1e-4, rtol=1e-4)
    assert jnp.allclose(out["clip_loss"], rc, atol=1e-4, rtol=1e-4)

    # No-mask specialization (skips the N*N mask DMA entirely).
    out2 = clip_loss(audio, motion, logit_scale, None)
    jax.block_until_ready(out2)
    ra2, rm2, rc2 = _ref_clip_loss(audio, motion, logit_scale,
                                   jnp.zeros((N, N), jnp.float32))
    assert jnp.allclose(out2["audio_loss"], ra2, atol=1e-4, rtol=1e-4)
    assert jnp.allclose(out2["motion_loss"], rm2, atol=1e-4, rtol=1e-4)
    assert jnp.allclose(out2["clip_loss"], rc2, atol=1e-4, rtol=1e-4)

    # bf16 feature smoke test: MXU is fed native bf16 (no in-kernel upcast).
    out3 = clip_loss(audio.astype(jnp.bfloat16), motion.astype(jnp.bfloat16),
                     logit_scale, clip_mask)
    jax.block_until_ready(out3)
    assert bool(jnp.isfinite(out3["clip_loss"]))

    print("KERNEL_OK")
</pallas_src>

<mosaic_0001>
module attributes {stable_mosaic.version = 11 : i64} {
  func.func @kernel(%arg0: i32, %arg1: memref<1x1xf32, #tpu.memory_space<smem>>, %arg2: memref<8x128xf32, #tpu.memory_space<vmem>>, %arg3: memref<8x128xf32, #tpu.memory_space<vmem>>, %arg4: memref<8x128xf32, #tpu.memory_space<vmem>>, %arg5: memref<8x128xf32, #tpu.memory_space<vmem>>, %arg6: memref<8x8xf32, #tpu.memory_space<vmem>>, %arg7: memref<8x1xf32, #tpu.memory_space<vmem>>, %arg8: memref<8x1xf32, #tpu.memory_space<vmem>>, %arg9: memref<8x1xf32, #tpu.memory_space<vmem>>) attributes {dimension_semantics = [#tpu.dimension_semantics<parallel>], iteration_bounds = array<i64: 1>, scalar_prefetch = 0 : i64, scratch_operands = 0 : i64, tpu.core_type = #tpu.core_type<tc>, window_params = [{transform_indices = @transform_0, window_bounds = array<i64: 1, 1>}, {transform_indices = @transform_1, window_bounds = array<i64: 8, 128>}, {transform_indices = @transform_2, window_bounds = array<i64: 8, 128>}, {pipeline_mode = #tpu.pipeline_mode<synchronous>, transform_indices = @transform_3, window_bounds = array<i64: 8, 128>}, {pipeline_mode = #tpu.pipeline_mode<synchronous>, transform_indices = @transform_4, window_bounds = array<i64: 8, 128>}, {transform_indices = @transform_5, window_bounds = array<i64: 8, 8>}, {transform_indices = @transform_6, window_bounds = array<i64: 8, 1>}, {transform_indices = @transform_7, window_bounds = array<i64: 8, 1>}, {transform_indices = @transform_8, window_bounds = array<i64: 8, 1>}]} {
    %c0 = arith.constant 0 : index
    %c0_0 = arith.constant 0 : index
    %0 = memref.load %arg1[%c0, %c0_0] : memref<1x1xf32, #tpu.memory_space<smem>>
    %c0_1 = arith.constant 0 : index
    %c0_2 = arith.constant 0 : index
    %1 = vector.load %arg2[%c0_1, %c0_2] : memref<8x128xf32, #tpu.memory_space<vmem>>, vector<8x128xf32>
    %c0_3 = arith.constant 0 : index
    %c0_4 = arith.constant 0 : index
    %2 = vector.load %arg3[%c0_3, %c0_4] : memref<8x128xf32, #tpu.memory_space<vmem>>, vector<8x128xf32>
    %c0_5 = arith.constant 0 : index
    %c0_6 = arith.constant 0 : index
    %3 = vector.load %arg4[%c0_5, %c0_6] : memref<8x128xf32, #tpu.memory_space<vmem>>, vector<8x128xf32>
    %c0_7 = arith.constant 0 : index
    %c0_8 = arith.constant 0 : index
    %4 = vector.load %arg5[%c0_7, %c0_8] : memref<8x128xf32, #tpu.memory_space<vmem>>, vector<8x128xf32>
    %cst = arith.constant dense<0.000000e+00> : vector<8x8xf32>
    %5 = tpu.matmul %1, %4, %cst {dimension_numbers = #tpu.dot_dimension_numbers<[1], [1], [0], [0], [0, 0, 1, 0], [], []>} : vector<8x128xf32>, vector<8x128xf32>, vector<8x8xf32> -> vector<8x8xf32>
    %6 = vector.broadcast %0 : f32 to vector<8x8xf32>
    %7 = arith.mulf %6, %5 : vector<8x8xf32>
    %cst_9 = arith.constant dense<0.000000e+00> : vector<8x8xf32>
    %8 = tpu.matmul %2, %3, %cst_9 {dimension_numbers = #tpu.dot_dimension_numbers<[1], [1], [0], [0], [0, 0, 1, 0], [], []>} : vector<8x128xf32>, vector<8x128xf32>, vector<8x8xf32> -> vector<8x8xf32>
    %9 = vector.broadcast %0 : f32 to vector<8x8xf32>
    %10 = arith.mulf %9, %8 : vector<8x8xf32>
    %11 = arith.mulf %1, %2 : vector<8x128xf32>
    %cst_10 = arith.constant dense<0.000000e+00> : vector<8xf32>
    %12 = vector.multi_reduction <add>, %11, %cst_10 [1] : vector<8x128xf32> to vector<8xf32>
    %13 = vector.shape_cast %12 : vector<8xf32> to vector<8x1xf32>
    %14 = vector.broadcast %0 : f32 to vector<8x1xf32>
    %15 = arith.mulf %14, %13 : vector<8x1xf32>
    %c0_11 = arith.constant 0 : index
    %c0_12 = arith.constant 0 : index
    %16 = vector.load %arg6[%c0_11, %c0_12] : memref<8x8xf32, #tpu.memory_space<vmem>>, vector<8x8xf32>
    %17 = arith.addf %7, %16 : vector<8x8xf32>
    %18 = arith.addf %10, %16 : vector<8x8xf32>
    %c0_13 = arith.constant 0 : index
    %c0_14 = arith.constant 0 : index
    %19 = vector.load %arg7[%c0_13, %c0_14] : memref<8x1xf32, #tpu.memory_space<vmem>>, vector<8x1xf32>
    %20 = arith.addf %15, %19 : vector<8x1xf32>
    %cst_15 = arith.constant dense<0xFF800000> : vector<8xf32>
    %21 = vector.multi_reduction <maximumf>, %17, %cst_15 [1] : vector<8x8xf32> to vector<8xf32>
    %22 = vector.shape_cast %21 : vector<8xf32> to vector<8x1xf32>
    %23 = vector.broadcast %22 : vector<8x1xf32> to vector<8x8xf32>
    %24 = arith.subf %17, %23 : vector<8x8xf32>
    %25 = math.exp %24 : vector<8x8xf32>
    %cst_16 = arith.constant dense<0.000000e+00> : vector<8xf32>
    %26 = vector.multi_reduction <add>, %25, %cst_16 [1] : vector<8x8xf32> to vector<8xf32>
    %27 = vector.shape_cast %26 : vector<8xf32> to vector<8x1xf32>
    %28 = math.log %27 : vector<8x1xf32>
    %29 = arith.addf %22, %28 : vector<8x1xf32>
    %30 = arith.subf %29, %20 : vector<8x1xf32>
    %c0_17 = arith.constant 0 : index
    %c0_18 = arith.constant 0 : index
    %31 = vector.load %arg8[%c0_17, %c0_18] : memref<8x1xf32, #tpu.memory_space<vmem>>, vector<8x1xf32>
    tpu.vector_store %arg8[%c0_17, %c0_18], %30 {strides = array<i32>} : memref<8x1xf32, #tpu.memory_space<vmem>>, vector<8x1xf32>,
    %cst_19 = arith.constant dense<0xFF800000> : vector<8xf32>
    %32 = vector.multi_reduction <maximumf>, %18, %cst_19 [1] : vector<8x8xf32> to vector<8xf32>
    %33 = vector.shape_cast %32 : vector<8xf32> to vector<8x1xf32>
    %34 = vector.broadcast %33 : vector<8x1xf32> to vector<8x8xf32>
    %35 = arith.subf %18, %34 : vector<8x8xf32>
    %36 = math.exp %35 : vector<8x8xf32>
    %cst_20 = arith.constant dense<0.000000e+00> : vector<8xf32>
    %37 = vector.multi_reduction <add>, %36, %cst_20 [1] : vector<8x8xf32> to vector<8xf32>
    %38 = vector.shape_cast %37 : vector<8xf32> to vector<8x1xf32>
    %39 = math.log %38 : vector<8x1xf32>
    %40 = arith.addf %33, %39 : vector<8x1xf32>
    %41 = arith.subf %40, %20 : vector<8x1xf32>
    %c0_21 = arith.constant 0 : index
    %c0_22 = arith.constant 0 : index
    %42 = vector.load %arg9[%c0_21, %c0_22] : memref<8x1xf32, #tpu.memory_space<vmem>>, vector<8x1xf32>
    tpu.vector_store %arg9[%c0_21, %c0_22], %41 {strides = array<i32>} : memref<8x1xf32, #tpu.memory_space<vmem>>, vector<8x1xf32>,
    return
  }
  func.func @transform_0(%arg0: i32) -> (i32, i32) {
    %c0_i32 = arith.constant 0 : i32
    %c0_i32_0 = arith.constant 0 : i32
    %c0_i32_1 = arith.constant 0 : i32
    return %c0_i32, %c0_i32_0 : i32, i32
  }
  func.func @transform_1(%arg0: i32) -> (i32, i32) {
    %c0_i32 = arith.constant 0 : i32
    %c0_i32_0 = arith.constant 0 : i32
    return %arg0, %c0_i32 : i32, i32
  }
  func.func @transform_2(%arg0: i32) -> (i32, i32) {
    %c0_i32 = arith.constant 0 : i32
    %c0_i32_0 = arith.constant 0 : i32
    return %arg0, %c0_i32 : i32, i32
  }
  func.func @transform_3(%arg0: i32) -> (i32, i32) {
    %c0_i32 = arith.constant 0 : i32
    %c0_i32_0 = arith.constant 0 : i32
    %c0_i32_1 = arith.constant 0 : i32
    return %c0_i32, %c0_i32_0 : i32, i32
  }
  func.func @transform_4(%arg0: i32) -> (i32, i32) {
    %c0_i32 = arith.constant 0 : i32
    %c0_i32_0 = arith.constant 0 : i32
    %c0_i32_1 = arith.constant 0 : i32
    return %c0_i32, %c0_i32_0 : i32, i32
  }
  func.func @transform_5(%arg0: i32) -> (i32, i32) {
    %c0_i32 = arith.constant 0 : i32
    %c0_i32_0 = arith.constant 0 : i32
    return %arg0, %c0_i32 : i32, i32
  }
  func.func @transform_6(%arg0: i32) -> (i32, i32) {
    %c0_i32 = arith.constant 0 : i32
    %c0_i32_0 = arith.constant 0 : i32
    return %arg0, %c0_i32 : i32, i32
  }
  func.func @transform_7(%arg0: i32) -> (i32, i32) {
    %c0_i32 = arith.constant 0 : i32
    %c0_i32_0 = arith.constant 0 : i32
    return %arg0, %c0_i32 : i32, i32
  }
  func.func @transform_8(%arg0: i32) -> (i32, i32) {
    %c0_i32 = arith.constant 0 : i32
    %c0_i32_0 = arith.constant 0 : i32
    return %arg0, %c0_i32 : i32, i32
  }
}

</mosaic_0001>

<bundles_post_ra>
// kernel: tpu_custom_call.1
= control target key start
LH: loop header
LB: loop body
LE: loop exit
PB: predicated region body
PF: predicated region fallthrough
CT: control target
= control target key end

     0   :  { %15 = vsyncpa [#allocation4], 0  ;;  %s376_s0 = inlined_call_operand.<no memory space> [shape: f32[1,1], index: 0, kind: input, shape index: {}]   ;;  %s377_s1 = inlined_call_operand.vmem [shape: f32[8,128], index: 1, kind: input, shape index: {}]   ;;  %s378_s2 = inlined_call_operand.hbm [shape: f32[8,128], index: 2, kind: input, shape index: {}]   ;;  %s379_s3 = inlined_call_operand.hbm [shape: f32[8,128], index: 3, kind: input, shape index: {}]   ;;  %s380_s4 = inlined_call_operand.hbm [shape: f32[8,128], index: 4, kind: input, shape index: {}]   ;;  %s381_s5 = inlined_call_operand.hbm [shape: f32[8,8], index: 5, kind: input, shape index: {}]   ;;  %s382_s6 = inlined_call_operand.vmem [shape: f32[8,1], index: 6, kind: input, shape index: {}]   ;;  %s383_s7 = inlined_call_operand.vmem [shape: f32[8,1], index: 7, kind: output, shape index: {0}]   ;;  %s384_s8 = inlined_call_operand.vmem [shape: f32[8,1], index: 8, kind: output, shape index: {1}]  }
   0x1   :  { %16 = vsyncpa [#allocation6], 0  ;;  %s38_s29 = sshll.u32 %s379_s3, 4  ;;  %s39_s29 = int_to_ptr.hbm [resolvable:$true] %s38_s29 }
   0x2   :  { %17 = vsyncpa [#allocation9], 0  ;;  %s296_s30 = smov [#allocation5]   ;;  %s27_s12 = sshll.u32 %s378_s2, 4  ;;  %s28_s12 = int_to_ptr.hbm [resolvable:$true] %s27_s12 }
   0x3   :  { %s40_s9 = sshll.u32 %s296_s30, 4  ;;  %s297_s13 = smov [#allocation3]   ;;  %s41_s9 = int_to_ptr.vmem [resolvable:$true] %s40_s9 }
   0x4   :  { %43 = dma.hbm_to_vmem [thread:$0]  %s39_s29, 128, %s41_s9, [#allocation6]  }
   0x5   :  { %s29_s14 = sshll.u32 %s297_s13, 4  ;;  %s49_s17 = sshll.u32 %s380_s4, 4  ;;  %s30_s14 = int_to_ptr.vmem [resolvable:$true] %s29_s14  ;;  %s50_s17 = int_to_ptr.hbm [resolvable:$true] %s49_s17 }
   0x6   :  { %32 = dma.hbm_to_vmem [thread:$0]  %s28_s12, 128, %s30_s14, [#allocation4]  }
   0x7   :  { %s60_s19 = sshll.u32 %s381_s5, 4  ;;  %s298_s20 = smov [#allocation7]   ;;  %s61_s19 = int_to_ptr.hbm [resolvable:$true] %s60_s19 }
   0x8   :  { %s51_s21 = sshll.u32 %s298_s20, 4  ;;  %s299_s2 = smov [#allocation8]   ;;  %s52_s21 = int_to_ptr.vmem [resolvable:$true] %s51_s21 }
   0x9   :  { %54 = dma.hbm_to_vmem [thread:$0]  %s50_s17, 128, %s52_s21, [#allocation6]  }
   0xa   :  { %s62_s22 = sshll.u32 %s299_s2, 4  ;;  %s63_s22 = int_to_ptr.vmem [resolvable:$true] %s62_s22 }
   0xb   :  { %65 = dma.hbm_to_vmem [thread:$0]  %s61_s19, 128, %s63_s22, [#allocation9]  }
   0xc   :  { %290 = dma.done.wait [#allocation4], 128  }
   0xd   :  { %291 = vsyncadd [#allocation4], 4294967168 }
   0xe   :  { %292 = dma.done.wait [#allocation6], 256  }
   0xf   :  { %293 = vsyncadd [#allocation6], 4294967040 }
  0x10   :  { %294 = dma.done.wait [#allocation9], 128  }
  0x11   :  { %295 = vsyncadd [#allocation9], 4294967168  ;;  %v88_v0 = vld [vmem:[#allocation7] sm:$0xff]  ;;  %v87_v1 = vld [vmem:[#allocation5] sm:$0xff]  ;;  %v109_v4 = vstv %s376_s0  ;;  %vm141_vm0 = vcmask 64512   ;;  %vm155_vm1 = vcmask 7168  }
  0x12   :  { %104 = vmatpush.xpose.msra.mxu0 %v88_v0  ;;  %v85_v2 = vld [vmem:[%s377_s1] sm:$0xff]  ;;  %126 = vmatpush.xpose.msra.mxu1 %v87_v1  ;;  %v136_v6 = vld [vmem:[#allocation8] sm:$0xff] }
  0x13   :  { %v86_v3 = vld [vmem:[#allocation3] sm:$0xff] }
  0x14   :  { %v132_v14 = vmul.f32 %v86_v3, %v85_v2  ;;  %v139_v28 = vld [vmem:[%s382_s6] sm:$0xff] }
  0x15   :  { %105 = vmatmul.f32.vlgmr.msra.gmra.mxu0 %v85_v2  ;;  %127 = vmatmul.f32.vlgmr.msra.gmra.mxu1 %v86_v3 }
  0x16   :  { %133 = vadd.xlane.f32.xlu2 %v132_v14 }
  0x89   :  { %v134_v26 = vpop.xlane.xlu2 %133 }
  0x8a   :  { %v135_v27 = vmul.f32 %v134_v26, %v109_v4 }
  0x8c   :  { %v140_v31 = vadd.f32 %v139_v28, %v135_v27 }
  0x92   :  { %v106_v5 = vpop.f32.mrf.mxu0  ;;  %v128_v7 = vpop.f32.mrf.mxu1 }
  0x93   :  { %v110_v8 = vmul.f32 %v109_v4, %v106_v5  ;;  %v131_v10 = vmul.f32 %v128_v7, %v109_v4 }
  0x95   :  { %v137_v9 = vadd.f32 %v136_v6, %v110_v8  ;;  %v138_v12 = vadd.f32 %v136_v6, %v131_v10 }
  0x97   :  { %v142_v11 = vsel %vm141_vm0, %v137_v9, -inf  ;;  %v157_v13 = vsel %vm141_vm0, %v138_v12, -inf }
  0x98   :  { %143 = vmax.xlane.f32.xlu0 %v142_v11 }
  0xa0   :  { %158 = vmax.xlane.f32.xlu0 %v157_v13 }
 0x10b   :  { %v144_v15 = vpop.xlane.xlu0 %143 }
 0x10c   :  { %v145_v16 = vsub.f32 %v137_v9, %v144_v15 }
 0x10e   :  { %v146_v17 = vmul.f32 1.442695, %v145_v16 }
 0x110   :  { %186 = vpow2.f32 %v146_v17 }
 0x113   :  { %v159_v18 = vpop.xlane.xlu0 %158 }
 0x114   :  { %v160_v19 = vsub.f32 %v138_v12, %v159_v18 }
 0x116   :  { %v187_v20 = vpop.eup %186  ;;  %v161_v21 = vmul.f32 1.442695, %v160_v19 }
 0x117   :  { %v148_v22 = vsel %vm141_vm0, %v187_v20, 0.0 }
 0x118   :  { %188 = vpow2.f32 %v161_v21  ;;  %149 = vadd.xlane.f32.xlu1 %v148_v22 }
 0x11e   :  { %v189_v23 = vpop.eup %188 }
 0x11f   :  { %v163_v24 = vsel %vm141_vm0, %v189_v23, 0.0 }
 0x120   :  { %164 = vadd.xlane.f32.xlu1 %v163_v24 }
 0x18b   :  { %v150_v25 = vpop.xlane.xlu1 %149 }
 0x18c   :  { %190 = vlog2.f32 %v150_v25 }
 0x192   :  { %v191_v29 = vpop.eup %190 }
 0x193   :  { %v152_v30 = vmul.f32 0.6931472, %v191_v29  ;;  %v165_v32 = vpop.xlane.xlu1 %164 }
 0x194   :  { %192 = vlog2.f32 %v165_v32 }
 0x195   :  { %v153_v33 = vadd.f32 %v152_v30, %v144_v15 }
 0x197   :  { %v154_v34 = vsub.f32 %v153_v33, %v140_v31 }
 0x199   :  { %156 = vst.msk [vmem:[%s383_s7] sm:$0xff] %vm155_vm1, %v154_v34 }
 0x19a   :  { %v193_v35 = vpop.eup %192 }
 0x19b   :  { %v167_v36 = vmul.f32 0.6931472, %v193_v35 }
 0x19d   :  { %v168_v37 = vadd.f32 %v167_v36, %v159_v18 }
 0x19f   :  { %v169_v38 = vsub.f32 %v168_v37, %v140_v31 }
 0x1a1   :  { %170 = vst.msk [vmem:[%s384_s8] sm:$0xff] %vm155_vm1, %v169_v38 }
 0x1a2   :  { %179 = vsyncpa [#allocation4], 1 }
 0x1a3   :  { %180 = vsyncpa [#allocation6], 1 }
 0x1a4   :  { %181 = vsyncpa [#allocation9], 1 }

</bundles_post_ra>
